<compile_context>
chip_gen: v7x
topology: tpu7x:2x2x1
jax: 0.10.0
libtpu: 0.0.40
codegen_flags: <defaults>
</compile_context>

<pallas_src>
import math

import jax
import jax.numpy as jnp
from jax.experimental import pallas as pl
from jax.experimental.pallas import tpu as pltpu


def _classifier_kernel(h1_ref, h2_ref,
                       w1_ref, b1_ref,
                       w2_ref, b2_ref,
                       w3_ref, b3_ref,
                       o_ref):
    # Subtract in f32 (works for f32 or bf16 inputs; no bf16 VPU on v5e),
    # then cast only the MXU operand to bf16.
    h = (h1_ref[...].astype(jnp.float32)
         - h2_ref[...].astype(jnp.float32)).astype(jnp.bfloat16)

    # fc1 + LeakyReLU(0.1)   (bf16 x bf16 -> f32 accumulate on the MXU)
    z1 = jnp.dot(h, w1_ref[...], preferred_element_type=jnp.float32) + b1_ref[...]
    a1 = jnp.maximum(z1, 0.1 * z1).astype(jnp.bfloat16)

    # fc2 + LeakyReLU(0.1)
    z2 = jnp.dot(a1, w2_ref[...], preferred_element_type=jnp.float32) + b2_ref[...]
    a2 = jnp.maximum(z2, 0.1 * z2).astype(jnp.bfloat16)

    # fc3 (NormalizedLinear; weight pre-normalized & zero-padded to 128 lanes).
    # Single contiguous, unmasked full-vreg store per tile; cast on store only.
    o_ref[...] = (jnp.dot(a2, w3_ref[...], preferred_element_type=jnp.float32)
                  + b3_ref[...]).astype(o_ref.dtype)


def _round_up(x, m):
    return (x + m - 1) // m * m


def _choose_tile_rows(B, D, block_rows):
    """Batch rows per grid step: multiple of 16 (bf16 sublane packing),
    VMEM-aware, and >= 2 grid steps when there is enough work (v7x megacore)."""
    tb = min(block_rows, _round_up(B, 16))
    # Ensure the 'parallel' batch axis has >= 2 steps so it shards across
    # both v7x TensorCores (harmless elsewhere).
    if B > 32 and pl.cdiv(B, tb) < 2:
        tb = _round_up(pl.cdiv(B, 2), 16)
    # VMEM guard (v7x: 32 MiB default scoped / 64 MiB physical). Per step:
    #   2 inputs x 2 buffers x tb x D x 4B (f32 tiles)
    #   output  x 2 buffers x tb x 128 x 2B (bf16)
    #   ~3 x tb x 128 x 4B f32 temporaries (+ small resident bf16 weights).
    budget = 24 << 20
    per_row = 2 * 2 * D * 4 + 2 * 128 * 2 + 3 * 128 * 4
    max_tb = max(16, (budget // per_row) // 16 * 16)
    return min(tb, max_tb)


def jigsaw_position_classifier(h1, h2, params, D, class_num=12,
                               block_rows=1024, out_dtype=jnp.bfloat16):
    """JAX/Pallas equivalent of MyJigsawPositionClassifier.forward.

    Returns (B, class_num) logits in `out_dtype` (bf16 by default; the f32
    accumulation happens in-kernel, only the final store is narrowed)."""
    # glue: view(-1, D).  Inputs are NOT pre-cast in the wrapper — the kernel
    # reads them in their HBM dtype and casts the matmul operands itself.
    h1 = h1.reshape(-1, D)
    h2 = h2.reshape(-1, D)
    B = h1.shape[0]

    w1, b1, w2, b2, w3, b3 = (params["w1"], params["b1"],
                              params["w2"], params["b2"],
                              params["w3"], params["b3"])

    hidden = w1.shape[0]                        # 128
    n_pad = _round_up(max(class_num, 1), 128)   # lane-dense final layer width

    # NormalizedLinear: norm over dim=0 of the (out_features, in_features)
    # weight — i.e. per input-feature column — matching the PyTorch module.
    # The tiny-eps guard only protects the degenerate all-zero column case
    # (where PyTorch would emit inf/NaN); documented behavioral difference.
    w3f = w3.astype(jnp.float32)
    norm = jnp.linalg.norm(w3f, axis=0, keepdims=True)
    w3n = w3f / jnp.maximum(norm, jnp.finfo(jnp.float32).tiny)

    # Pre-transpose weights to [in, out] for `x @ W`; ship them as bf16
    # (halves resident-weight VMEM + weight DMA; MXU runs at native bf16 rate).
    w1_t = w1.T.astype(jnp.bfloat16)                      # (D, 128)
    w2_t = w2.T.astype(jnp.bfloat16)                      # (128, 128)
    w3_t = jnp.zeros((hidden, n_pad), jnp.bfloat16).at[:, :class_num].set(
        w3n.T.astype(jnp.bfloat16))                       # (128, 128) padded
    b1_r = b1.reshape(1, -1).astype(jnp.float32)
    b2_r = b2.reshape(1, -1).astype(jnp.float32)
    b3_r = jnp.zeros((1, n_pad), jnp.float32).at[:, :class_num].set(
        b3.reshape(1, -1).astype(jnp.float32))

    tb = _choose_tile_rows(B, D, block_rows)

    tiled = lambda shape: pl.BlockSpec(shape, lambda i: (i, 0))
    resident = lambda shape: pl.BlockSpec(shape, lambda i: (0, 0))

    out = pl.pallas_call(
        _classifier_kernel,
        out_shape=jax.ShapeDtypeStruct((B, n_pad), out_dtype),
        grid=(pl.cdiv(B, tb),),                 # ragged boundary masked by Pallas
        in_specs=[
            tiled((tb, D)), tiled((tb, D)),
            resident((D, hidden)), resident((1, hidden)),
            resident((hidden, hidden)), resident((1, hidden)),
            resident((hidden, n_pad)), resident((1, n_pad)),
        ],
        out_specs=tiled((tb, n_pad)),
        compiler_params=pltpu.CompilerParams(
            dimension_semantics=("parallel",)),
    )(h1, h2, w1_t, b1_r, w2_t, b2_r, w3_t, b3_r)

    # Drop the zero-padded logit lanes (batch axis is already exact).
    return out[:, :class_num]


def init_params(key, D, class_num=12):
    """Deterministic parameter init mimicking PyTorch Linear defaults
    (kaiming-uniform weights, uniform(-1/sqrt(fan_in)) biases)."""
    def linear_init(k, out_f, in_f):
        kw, kb = jax.random.split(k)
        bound_w = math.sqrt(6.0 / in_f) / math.sqrt(1.0 + 5.0)  # kaiming, a=sqrt(5)
        w = jax.random.uniform(kw, (out_f, in_f), jnp.float32, -bound_w, bound_w)
        bound_b = 1.0 / math.sqrt(in_f)
        b = jax.random.uniform(kb, (out_f,), jnp.float32, -bound_b, bound_b)
        return w, b

    k1, k2, k3 = jax.random.split(key, 3)
    w1, b1 = linear_init(k1, 128, D)
    w2, b2 = linear_init(k2, 128, 128)
    w3, b3 = linear_init(k3, class_num, 128)
    return {"w1": w1, "b1": b1, "w2": w2, "b2": b2, "w3": w3, "b3": b3}


def reference_forward(h1, h2, params, D, class_num=12):
    """Pure-JAX f32 reference matching the PyTorch forward (no quantization,
    so the comparison actually exposes the kernel's bf16 drift)."""
    h1 = h1.reshape(-1, D).astype(jnp.float32)
    h2 = h2.reshape(-1, D).astype(jnp.float32)
    h = h1 - h2
    h = h @ params["w1"].T + params["b1"]
    h = jnp.where(h >= 0, h, 0.1 * h)
    h = h @ params["w2"].T + params["b2"]
    h = jnp.where(h >= 0, h, 0.1 * h)
    w3n = params["w3"] / jnp.linalg.norm(params["w3"], axis=0, keepdims=True)
    return h @ w3n.T + params["b3"]


if __name__ == "__main__":
    K = 9              # unused by forward (bookkeeping only in the module)
    D = 64
    CLASS_NUM = 12

    key = jax.random.PRNGKey(0)
    kp, k1, k2 = jax.random.split(key, 3)
    params = init_params(kp, D, CLASS_NUM)

    # h1/h2 come from an encoder; the module views them as (-1, D).
    h1 = jax.random.normal(k1, (2, 4, D), jnp.float32)   # -> (8, D) after view
    h2 = jax.random.normal(k2, (2, 4, D), jnp.float32)

    logits = jigsaw_position_classifier(h1, h2, params, D, CLASS_NUM)
    logits = jax.block_until_ready(logits)

    ref = reference_forward(h1, h2, params, D, CLASS_NUM)
    assert logits.shape == (8, CLASS_NUM)
    err = float(jnp.max(jnp.abs(logits.astype(jnp.float32) - ref)))
    # bf16 matmul operands + bf16 output store => ~1e-2-level drift vs pure f32.
    assert err < 5e-2, err

    print("KERNEL_OK")
</pallas_src>

<mosaic_0001>
module attributes {stable_mosaic.version = 11 : i64} {
  func.func @_classifier_kernel(%arg0: i32, %arg1: memref<16x64xf32, #tpu.memory_space<vmem>>, %arg2: memref<16x64xf32, #tpu.memory_space<vmem>>, %arg3: memref<64x128xbf16, #tpu.memory_space<vmem>>, %arg4: memref<1x128xf32, #tpu.memory_space<vmem>>, %arg5: memref<128x128xbf16, #tpu.memory_space<vmem>>, %arg6: memref<1x128xf32, #tpu.memory_space<vmem>>, %arg7: memref<128x128xbf16, #tpu.memory_space<vmem>>, %arg8: memref<1x128xf32, #tpu.memory_space<vmem>>, %arg9: memref<16x128xbf16, #tpu.memory_space<vmem>>) attributes {dimension_semantics = [#tpu.dimension_semantics<parallel>], iteration_bounds = array<i64: 1>, scalar_prefetch = 0 : i64, scratch_operands = 0 : i64, tpu.core_type = #tpu.core_type<tc>, window_params = [{transform_indices = @transform_0, window_bounds = array<i64: 16, 64>}, {transform_indices = @transform_1, window_bounds = array<i64: 16, 64>}, {pipeline_mode = #tpu.pipeline_mode<synchronous>, transform_indices = @transform_2, window_bounds = array<i64: 64, 128>}, {pipeline_mode = #tpu.pipeline_mode<synchronous>, transform_indices = @transform_3, window_bounds = array<i64: 1, 128>}, {pipeline_mode = #tpu.pipeline_mode<synchronous>, transform_indices = @transform_4, window_bounds = array<i64: 128, 128>}, {pipeline_mode = #tpu.pipeline_mode<synchronous>, transform_indices = @transform_5, window_bounds = array<i64: 1, 128>}, {pipeline_mode = #tpu.pipeline_mode<synchronous>, transform_indices = @transform_6, window_bounds = array<i64: 128, 128>}, {pipeline_mode = #tpu.pipeline_mode<synchronous>, transform_indices = @transform_7, window_bounds = array<i64: 1, 128>}, {transform_indices = @transform_8, window_bounds = array<i64: 16, 128>}]} {
    %c0 = arith.constant 0 : index
    %c0_0 = arith.constant 0 : index
    %0 = vector.load %arg1[%c0, %c0_0] : memref<16x64xf32, #tpu.memory_space<vmem>>, vector<16x64xf32>
    %c0_1 = arith.constant 0 : index
    %c0_2 = arith.constant 0 : index
    %1 = vector.load %arg2[%c0_1, %c0_2] : memref<16x64xf32, #tpu.memory_space<vmem>>, vector<16x64xf32>
    %2 = arith.subf %0, %1 : vector<16x64xf32>
    %3 = arith.truncf %2 : vector<16x64xf32> to vector<16x64xbf16>
    %c0_3 = arith.constant 0 : index
    %c0_4 = arith.constant 0 : index
    %4 = vector.load %arg3[%c0_3, %c0_4] : memref<64x128xbf16, #tpu.memory_space<vmem>>, vector<64x128xbf16>
    %cst = arith.constant dense<0.000000e+00> : vector<16x128xf32>
    %5 = tpu.matmul %3, %4, %cst {dimension_numbers = #tpu.dot_dimension_numbers<[1], [0], [0], [1], [0, 0, 1, 1], [], []>} : vector<16x64xbf16>, vector<64x128xbf16>, vector<16x128xf32> -> vector<16x128xf32>
    %c0_5 = arith.constant 0 : index
    %c0_6 = arith.constant 0 : index
    %6 = vector.load %arg4[%c0_5, %c0_6] : memref<1x128xf32, #tpu.memory_space<vmem>>, vector<1x128xf32>
    %7 = vector.broadcast %6 : vector<1x128xf32> to vector<16x128xf32>
    %8 = arith.addf %5, %7 : vector<16x128xf32>
    %cst_7 = arith.constant 1.000000e-01 : f32
    %9 = vector.broadcast %cst_7 : f32 to vector<16x128xf32>
    %10 = arith.mulf %9, %8 : vector<16x128xf32>
    %11 = arith.maximumf %8, %10 : vector<16x128xf32>
    %12 = arith.truncf %11 : vector<16x128xf32> to vector<16x128xbf16>
    %c0_8 = arith.constant 0 : index
    %c0_9 = arith.constant 0 : index
    %13 = vector.load %arg5[%c0_8, %c0_9] : memref<128x128xbf16, #tpu.memory_space<vmem>>, vector<128x128xbf16>
    %cst_10 = arith.constant dense<0.000000e+00> : vector<16x128xf32>
    %14 = tpu.matmul %12, %13, %cst_10 {dimension_numbers = #tpu.dot_dimension_numbers<[1], [0], [0], [1], [0, 0, 1, 1], [], []>} : vector<16x128xbf16>, vector<128x128xbf16>, vector<16x128xf32> -> vector<16x128xf32>
    %c0_11 = arith.constant 0 : index
    %c0_12 = arith.constant 0 : index
    %15 = vector.load %arg6[%c0_11, %c0_12] : memref<1x128xf32, #tpu.memory_space<vmem>>, vector<1x128xf32>
    %16 = vector.broadcast %15 : vector<1x128xf32> to vector<16x128xf32>
    %17 = arith.addf %14, %16 : vector<16x128xf32>
    %cst_13 = arith.constant 1.000000e-01 : f32
    %18 = vector.broadcast %cst_13 : f32 to vector<16x128xf32>
    %19 = arith.mulf %18, %17 : vector<16x128xf32>
    %20 = arith.maximumf %17, %19 : vector<16x128xf32>
    %21 = arith.truncf %20 : vector<16x128xf32> to vector<16x128xbf16>
    %c0_14 = arith.constant 0 : index
    %c0_15 = arith.constant 0 : index
    %22 = vector.load %arg7[%c0_14, %c0_15] : memref<128x128xbf16, #tpu.memory_space<vmem>>, vector<128x128xbf16>
    %cst_16 = arith.constant dense<0.000000e+00> : vector<16x128xf32>
    %23 = tpu.matmul %21, %22, %cst_16 {dimension_numbers = #tpu.dot_dimension_numbers<[1], [0], [0], [1], [0, 0, 1, 1], [], []>} : vector<16x128xbf16>, vector<128x128xbf16>, vector<16x128xf32> -> vector<16x128xf32>
    %c0_17 = arith.constant 0 : index
    %c0_18 = arith.constant 0 : index
    %24 = vector.load %arg8[%c0_17, %c0_18] : memref<1x128xf32, #tpu.memory_space<vmem>>, vector<1x128xf32>
    %25 = vector.broadcast %24 : vector<1x128xf32> to vector<16x128xf32>
    %26 = arith.addf %23, %25 : vector<16x128xf32>
    %27 = arith.truncf %26 : vector<16x128xf32> to vector<16x128xbf16>
    %c0_19 = arith.constant 0 : index
    %c0_20 = arith.constant 0 : index
    %28 = vector.load %arg9[%c0_19, %c0_20] : memref<16x128xbf16, #tpu.memory_space<vmem>>, vector<16x128xbf16>
    tpu.vector_store %arg9[%c0_19, %c0_20], %27 {strides = array<i32>} : memref<16x128xbf16, #tpu.memory_space<vmem>>, vector<16x128xbf16>,
    return
  }
  func.func @transform_0(%arg0: i32) -> (i32, i32) {
    %c0_i32 = arith.constant 0 : i32
    %c0_i32_0 = arith.constant 0 : i32
    return %arg0, %c0_i32 : i32, i32
  }
  func.func @transform_1(%arg0: i32) -> (i32, i32) {
    %c0_i32 = arith.constant 0 : i32
    %c0_i32_0 = arith.constant 0 : i32
    return %arg0, %c0_i32 : i32, i32
  }
  func.func @transform_2(%arg0: i32) -> (i32, i32) {
    %c0_i32 = arith.constant 0 : i32
    %c0_i32_0 = arith.constant 0 : i32
    %c0_i32_1 = arith.constant 0 : i32
    return %c0_i32, %c0_i32_0 : i32, i32
  }
  func.func @transform_3(%arg0: i32) -> (i32, i32) {
    %c0_i32 = arith.constant 0 : i32
    %c0_i32_0 = arith.constant 0 : i32
    %c0_i32_1 = arith.constant 0 : i32
    return %c0_i32, %c0_i32_0 : i32, i32
  }
  func.func @transform_4(%arg0: i32) -> (i32, i32) {
    %c0_i32 = arith.constant 0 : i32
    %c0_i32_0 = arith.constant 0 : i32
    %c0_i32_1 = arith.constant 0 : i32
    return %c0_i32, %c0_i32_0 : i32, i32
  }
  func.func @transform_5(%arg0: i32) -> (i32, i32) {
    %c0_i32 = arith.constant 0 : i32
    %c0_i32_0 = arith.constant 0 : i32
    %c0_i32_1 = arith.constant 0 : i32
    return %c0_i32, %c0_i32_0 : i32, i32
  }
  func.func @transform_6(%arg0: i32) -> (i32, i32) {
    %c0_i32 = arith.constant 0 : i32
    %c0_i32_0 = arith.constant 0 : i32
    %c0_i32_1 = arith.constant 0 : i32
    return %c0_i32, %c0_i32_0 : i32, i32
  }
  func.func @transform_7(%arg0: i32) -> (i32, i32) {
    %c0_i32 = arith.constant 0 : i32
    %c0_i32_0 = arith.constant 0 : i32
    %c0_i32_1 = arith.constant 0 : i32
    return %c0_i32, %c0_i32_0 : i32, i32
  }
  func.func @transform_8(%arg0: i32) -> (i32, i32) {
    %c0_i32 = arith.constant 0 : i32
    %c0_i32_0 = arith.constant 0 : i32
    return %arg0, %c0_i32 : i32, i32
  }
}

</mosaic_0001>

<bundles_post_ra>
// kernel: tpu_custom_call.1
= control target key start
LH: loop header
LB: loop body
LE: loop exit
PB: predicated region body
PF: predicated region fallthrough
CT: control target
= control target key end

     0   :  { %13 = vsyncpa [#allocation3], 0  ;;  %s909_s0 = inlined_call_operand.hbm [shape: f32[8,64], index: 0, kind: input, shape index: {}]   ;;  %s910_s1 = inlined_call_operand.hbm [shape: f32[8,64], index: 1, kind: input, shape index: {}]   ;;  %s911_s2 = inlined_call_operand.hbm [shape: bf16[64,128], index: 2, kind: input, shape index: {}]   ;;  %s912_s3 = inlined_call_operand.vmem [shape: f32[1,128], index: 3, kind: input, shape index: {}]   ;;  %s913_s4 = inlined_call_operand.hbm [shape: bf16[128,128], index: 4, kind: input, shape index: {}]   ;;  %s914_s5 = inlined_call_operand.vmem [shape: f32[1,128], index: 5, kind: input, shape index: {}]   ;;  %s915_s6 = inlined_call_operand.hbm [shape: bf16[128,128], index: 6, kind: input, shape index: {}]   ;;  %s916_s7 = inlined_call_operand.vmem [shape: f32[1,128], index: 7, kind: input, shape index: {}]   ;;  %s917_s8 = inlined_call_operand.hbm [shape: bf16[8,128], index: 8, kind: output, shape index: {}]  }
   0x1   :  { %14 = vsyncpa [#allocation6], 0 }
   0x2   :  { %15 = vsyncpa [#allocation9], 0 }
   0x3   :  { %16 = vsyncpa [#allocation4], 0 }
   0x4   :  { %21 = vsyncadd [#allocation3], 128  ;;  %s733_s27 = smov [#allocation2]   ;;  %s593_s9 = scalar_lea.hbm %s909_s0, 128 }
   0x5   :  { %s22_s28 = sshll.u32 %s733_s27, 4  ;;  %p594_p0 = scmp.ne.s32.totalorder %s909_s0, %s593_s9  ;;  %s23_s28 = int_to_ptr.vmem [resolvable:$true] %s22_s28 }
   0x6   :  { %p597_p1 = scmp.lt.u32.totalorder %s593_s9, %s909_s0 }
   0x8   :  { %p599_p2 = pnand %p597_p1, %p594_p0 }
   0xa   :  { %602 = shalt.err (!%p599_p2)
}
   0xb   :  { %s603_s14 = scalar_lea.vmem %s23_s28, 128  ;;  %s607_s15 = scalar_lea.vmem %s23_s28, 256 }
   0xc   :  { %p604_p3 = scmp.ne.s32.totalorder %s23_s28, %s603_s14  ;;  %p608_p4 = scmp.lt.s32.totalorder %s23_s28, %s23_s28 }
   0xd   :  { %p609_p5 = scmp.lt.s32.totalorder %s607_s15, %s603_s14 }
   0xf   :  { %p610_p6 = por %p609_p5, %p608_p4 }
  0x11   :  { %p611_p7 = pnand %p610_p6, %p604_p3 }
  0x13   :  { %614 = shalt.err (!%p611_p7)
}
  0x14   :  { %s734_s16 = smov 128   ;;  %s735_s17 = smov 8  }
  0x15   :  { %28 = dma.hbm_to_vmem [thread:$0]  %s909_s0, 128, %s23_s28, [#allocation3], %s734_s16, %s734_s16, %s735_s17  }
  0x16   :  { %33 = vsyncadd [#allocation6], 128  ;;  %s736_s20 = smov [#allocation5]   ;;  %s615_s24 = scalar_lea.hbm %s910_s1, 128 }
  0x17   :  { %s34_s21 = sshll.u32 %s736_s20, 4  ;;  %p616_p8 = scmp.ne.s32.totalorder %s910_s1, %s615_s24  ;;  %s35_s21 = int_to_ptr.vmem [resolvable:$true] %s34_s21 }
  0x18   :  { %p619_p9 = scmp.lt.u32.totalorder %s615_s24, %s910_s1 }
  0x1a   :  { %p621_p10 = pnand %p619_p9, %p616_p8 }
  0x1c   :  { %624 = shalt.err (!%p621_p10)
}
  0x1d   :  { %s625_s30 = scalar_lea.vmem %s35_s21, 128  ;;  %s629_s0 = scalar_lea.vmem %s35_s21, 256 }
  0x1e   :  { %p626_p11 = scmp.ne.s32.totalorder %s35_s21, %s625_s30  ;;  %p630_p12 = scmp.lt.s32.totalorder %s35_s21, %s35_s21 }
  0x1f   :  { %p631_p13 = scmp.lt.s32.totalorder %s629_s0, %s625_s30 }
  0x21   :  { %p632_p0 = por %p631_p13, %p630_p12 }
  0x23   :  { %p633_p1 = pnand %p632_p0, %p626_p11 }
  0x25   :  { %636 = shalt.err (!%p633_p1)
}
  0x26   :  { %40 = dma.hbm_to_vmem [thread:$0]  %s910_s1, 128, %s35_s21, [#allocation6], %s734_s16, %s734_s16, %s735_s17  }
  0x27   :  { %s737_s10 = smov [#allocation8]   ;;  %s738_s12 = smov [#allocation7]  }
  0x28   :  { %s60_s11 = sshll.u32 %s737_s10, 4  ;;  %s46_s13 = sshll.u32 %s738_s12, 4  ;;  %s61_s11 = int_to_ptr.vmem [resolvable:$true] %s60_s11  ;;  %s47_s13 = int_to_ptr.vmem [resolvable:$true] %s46_s13 }
  0x29   :  { %s637_s18 = scalar_lea.hbm %s913_s4, 1024 }
  0x2a   :  { %p638_p2 = scmp.ne.s32.totalorder %s913_s4, %s637_s18  ;;  %p641_p3 = scmp.lt.u32.totalorder %s637_s18, %s913_s4 }
  0x2c   :  { %p643_p4 = pnand %p641_p3, %p638_p2 }
  0x2e   :  { %646 = shalt.err (!%p643_p4)
}
  0x2f   :  { %s647_s1 = scalar_lea.vmem %s61_s11, 1024  ;;  %p652_p6 = scmp.lt.s32.totalorder %s61_s11, %s61_s11 }
  0x30   :  { %p648_p5 = scmp.ne.s32.totalorder %s61_s11, %s647_s1  ;;  %p653_p7 = scmp.lt.s32.totalorder %s647_s1, %s647_s1 }
  0x32   :  { %p654_p8 = por %p653_p7, %p652_p6 }
  0x34   :  { %p655_p9 = pnand %p654_p8, %p648_p5 }
  0x36   :  { %658 = shalt.err (!%p655_p9)
}
  0x37   :  { %s739_s16 = smov 64   ;;  %s740_s17 = smov 4  }
  0x38   :  { %66 = dma.hbm_to_vmem [thread:$0]  %s913_s4, 1024, %s61_s11, [#allocation9], %s739_s16, %s739_s16, %s740_s17  }
  0x39   :  { %s659_s27 = scalar_lea.hbm %s911_s2, 512 }
  0x3a   :  { %p660_p10 = scmp.ne.s32.totalorder %s911_s2, %s659_s27  ;;  %p663_p11 = scmp.lt.u32.totalorder %s659_s27, %s911_s2 }
  0x3c   :  { %p665_p12 = pnand %p663_p11, %p660_p10 }
  0x3e   :  { %668 = shalt.err (!%p665_p12)
}
  0x3f   :  { %s669_s9 = scalar_lea.vmem %s47_s13, 512  ;;  %p674_p0 = scmp.lt.s32.totalorder %s47_s13, %s47_s13 }
  0x40   :  { %p670_p13 = scmp.ne.s32.totalorder %s47_s13, %s669_s9  ;;  %p675_p1 = scmp.lt.s32.totalorder %s669_s9, %s669_s9 }
  0x42   :  { %p676_p2 = por %p675_p1, %p674_p0 }
  0x44   :  { %p677_p3 = pnand %p676_p2, %p670_p13 }
  0x46   :  { %680 = shalt.err (!%p677_p3)
}
  0x47   :  { %52 = dma.hbm_to_vmem [thread:$0]  %s911_s2, 512, %s47_s13, [#allocation6], %s739_s16, %s739_s16, %s740_s17  }
  0x48   :  { %s741_s11 = smov [#allocation10]   ;;  %s681_s18 = scalar_lea.hbm %s915_s6, 1024 }
  0x49   :  { %s74_s12 = sshll.u32 %s741_s11, 4  ;;  %p682_p4 = scmp.ne.s32.totalorder %s915_s6, %s681_s18  ;;  %s75_s12 = int_to_ptr.vmem [resolvable:$true] %s74_s12 }
  0x4a   :  { %p685_p5 = scmp.lt.u32.totalorder %s681_s18, %s915_s6 }
  0x4c   :  { %p687_p6 = pnand %p685_p5, %p682_p4 }
  0x4e   :  { %690 = shalt.err (!%p687_p6)
}
  0x4f   :  { %s691_s1 = scalar_lea.vmem %s75_s12, 1024  ;;  %p696_p8 = scmp.lt.s32.totalorder %s75_s12, %s75_s12 }
  0x50   :  { %p692_p7 = scmp.ne.s32.totalorder %s75_s12, %s691_s1  ;;  %p697_p9 = scmp.lt.s32.totalorder %s691_s1, %s691_s1 }
  0x52   :  { %p698_p10 = por %p697_p9, %p696_p8 }
  0x54   :  { %p699_p11 = pnand %p698_p10, %p692_p7 }
  0x56   :  { %702 = shalt.err (!%p699_p11)
}
  0x57   :  { %80 = dma.hbm_to_vmem [thread:$0]  %s915_s6, 1024, %s75_s12, [#allocation9], %s739_s16, %s739_s16, %s740_s17  }
  0x58   :  { %725 = dma.done.wait [#allocation3], 256  }
  0x59   :  { %726 = vsyncadd [#allocation3], 4294967040 }
  0x5a   :  { %727 = dma.done.wait [#allocation6], 768  }
  0x5b   :  { %728 = vsyncadd [#allocation6], 4294966528 }
  0x5c   :  { %729 = dma.done.wait [#allocation9], 2048  }
  0x5d   :  { %730 = vsyncadd [#allocation9], 4294965248  ;;  %v742_v0 = vmov 0.0   ;;  %vm743_vm0 = vmmov 0   ;;  %v573_v1 = vld [vmem:[#allocation7] sm:$0xff]   ;;  %v574_v2 = vld [vmem:[#allocation7 + $0x8] sm:$0xff]  }
  0x5e   :  { %509 = vmatprep.subr.bf16.mxu0 %v742_v0  ;;  %517 = vmatprep.mubr.msk.bf16.mxu0 %vm743_vm0, %v742_v0  ;;  %v575_v3 = vld [vmem:[#allocation7 + $0x10] sm:$0xff]   ;;  %v99_v4 = vld [vmem:[#allocation2] sm:$0xff]  ;;  %v100_v5 = vld [vmem:[#allocation2 + $0x8] sm:$0xff]  ;;  %vm145_vm1 = vcmask 523264  }
  0x5f   :  { %521 = vmatprep.subr.bf16.mxu1 %v742_v0  ;;  %537 = vmatprep.mubr.msk.bf16.mxu1 %vm743_vm0, %v742_v0  ;;  %v101_v6 = vld [vmem:[#allocation5] sm:$0xff]  ;;  %v102_v7 = vld [vmem:[#allocation5 + $0x8] sm:$0xff]  ;;  %v577_v8 = vld [vmem:[#allocation8] sm:$0xff]  }
  0x60   :  { %510 = vmatpush3.bf16.msra.mxu0 %v573_v1  ;;  %522 = vmatpush3.bf16.msra.mxu1 %v577_v8  ;;  %v578_v9 = vld [vmem:[#allocation8 + $0x8] sm:$0xff]   ;;  %v103_v10 = vsub.f32 %v99_v4, %v101_v6  ;;  %v104_v11 = vsub.f32 %v100_v5, %v102_v7  ;;  %v576_v12 = vld [vmem:[#allocation7 + $0x18] sm:$0xff]   ;;  %v579_v13 = vld [vmem:[#allocation8 + $0x10] sm:$0xff]  }
  0x61   :  { %511 = vmatprep.subr.bf16.mxu0 %v742_v0  ;;  %523 = vmatprep.subr.bf16.mxu1 %v742_v0  ;;  %v580_v15 = vld [vmem:[#allocation8 + $0x18] sm:$0xff]   ;;  %v581_v16 = vld [vmem:[#allocation8 + $0x20] sm:$0xff]   ;;  %v582_v17 = vld [vmem:[#allocation8 + $0x28] sm:$0xff]  }
  0x62   :  { %v105_v14 = vpack.c.bf16 %v104_v11, %v103_v10  ;;  %v583_v18 = vld [vmem:[#allocation8 + $0x30] sm:$0xff]   ;;  %v584_v19 = vld [vmem:[#allocation8 + $0x38] sm:$0xff]   ;;  %v585_v20 = vld [vmem:[#allocation10] sm:$0xff]  }
  0x63   :  { %v586_v21 = vld [vmem:[#allocation10 + $0x8] sm:$0xff]   ;;  %v587_v22 = vld [vmem:[#allocation10 + $0x10] sm:$0xff]   ;;  %v588_v23 = vld [vmem:[#allocation10 + $0x18] sm:$0xff]  }
  0x64   :  { %512 = vmatpush3.bf16.msra.mxu0 %v574_v2  ;;  %524 = vmatpush3.bf16.msra.mxu1 %v578_v9  ;;  %v589_v24 = vld [vmem:[#allocation10 + $0x20] sm:$0xff]   ;;  %v590_v37 = vld [vmem:[#allocation10 + $0x28] sm:$0xff]   ;;  %v591_v38 = vld [vmem:[#allocation10 + $0x30] sm:$0xff]  }
  0x65   :  { %513 = vmatprep.subr.bf16.mxu0 %v742_v0  ;;  %525 = vmatprep.subr.bf16.mxu1 %v742_v0  ;;  %v453_v25 = vld [vmem:[%s912_s3] ss:$0 sm:$0xff]  ;;  %v592_v39 = vld [vmem:[#allocation10 + $0x38] sm:$0xff]  }
  0x66   :  { %v459_v40 = vld [vmem:[%s914_s5] ss:$0 sm:$0xff] }
  0x67   :  { %v468_v52 = vld [vmem:[%s916_s7] ss:$0 sm:$0xff] }
  0x68   :  { %514 = vmatpush3.bf16.msra.mxu0 %v575_v3  ;;  %526 = vmatpush3.bf16.msra.mxu1 %v579_v13 }
  0x69   :  { %515 = vmatprep.subr.bf16.mxu0 %v742_v0  ;;  %527 = vmatprep.subr.bf16.mxu1 %v742_v0 }
  0x6c   :  { %516 = vmatpush3.bf16.msra.mxu0 %v576_v12  ;;  %528 = vmatpush3.bf16.msra.mxu1 %v580_v15 }
  0x6d   :  { %541 = vmatprep.subr.bf16.mxu0 %v742_v0  ;;  %529 = vmatprep.subr.bf16.mxu1 %v742_v0 }
  0x6f   :  { %518 = vmatmul.mubr.msk.bf16.vlgmr.msra.gmra.mrb[0].mxu0 %vm145_vm1, %v105_v14 }
  0x70   :  { %557 = vmatprep.mubr.msk.bf16.mxu0 %vm743_vm0, %v742_v0  ;;  %530 = vmatpush3.bf16.msra.mxu1 %v581_v16 }
  0x71   :  { %531 = vmatprep.subr.bf16.mxu1 %v742_v0  ;;  %542 = vmatpush3.bf16.msra.mxu0 %v585_v20 }
  0x72   :  { %543 = vmatprep.subr.bf16.mxu0 %v742_v0 }
  0x74   :  { %532 = vmatpush3.bf16.msra.mxu1 %v582_v17 }
  0x75   :  { %533 = vmatprep.subr.bf16.mxu1 %v742_v0  ;;  %544 = vmatpush3.bf16.msra.mxu0 %v586_v21 }
  0x76   :  { %545 = vmatprep.subr.bf16.mxu0 %v742_v0 }
  0x78   :  { %534 = vmatpush3.bf16.msra.mxu1 %v583_v18 }
  0x79   :  { %535 = vmatprep.subr.bf16.mxu1 %v742_v0  ;;  %546 = vmatpush3.bf16.msra.mxu0 %v587_v22 }
  0x7a   :  { %547 = vmatprep.subr.bf16.mxu0 %v742_v0 }
  0x7c   :  { %536 = vmatpush3.bf16.msra.mxu1 %v584_v19 }
  0x7d   :  { %548 = vmatpush3.bf16.msra.mxu0 %v588_v23 }
  0x7e   :  { %549 = vmatprep.subr.bf16.mxu0 %v742_v0 }
  0x81   :  { %550 = vmatpush3.bf16.msra.mxu0 %v589_v24 }
  0x82   :  { %551 = vmatprep.subr.bf16.mxu0 %v742_v0 }
  0x85   :  { %552 = vmatpush3.bf16.msra.mxu0 %v590_v37 }
  0x86   :  { %553 = vmatprep.subr.bf16.mxu0 %v742_v0 }
  0x89   :  { %554 = vmatpush3.bf16.msra.mxu0 %v591_v38 }
  0x8a   :  { %555 = vmatprep.subr.bf16.mxu0 %v742_v0 }
  0x8d   :  { %556 = vmatpush3.bf16.msra.mxu0 %v592_v39 }
 0x142   :  { %v183_v26 = vpop.f32.mrb[0].mxu0 }
 0x143   :  { %v184_v27 = vadd.f32 %v453_v25, %v183_v26  ;;  %v519_v28 = vpop.f32.mrb[1].mxu0 }
 0x144   :  { %v186_v29 = vpop.f32.mrb[2].mxu0 }
 0x145   :  { %v190_v30 = vmul.f32 0.1, %v184_v27  ;;  %v187_v31 = vadd.f32 %v453_v25, %v186_v29  ;;  %v520_v32 = vpop.f32.mrb[3].mxu0 }
 0x147   :  { %v191_v33 = vmul.f32 0.1, %v187_v31  ;;  %v192_v34 = vmax.f32 %v184_v27, %v190_v30 }
 0x149   :  { %v193_v35 = vmax.f32 %v187_v31, %v191_v33 }
 0x14b   :  { %v194_v36 = vpack.c.bf16 %v193_v35, %v192_v34 }
 0x14d   :  { %538 = vmatmul.mubr.bf16.vlgmr.msra.gmra.mrb[0].mxu1 %v194_v36 }
 0x220   :  { %v300_v41 = vpop.f32.mrb[0].mxu1 }
 0x221   :  { %v301_v42 = vadd.f32 %v459_v40, %v300_v41  ;;  %v539_v43 = vpop.f32.mrb[1].mxu1 }
 0x222   :  { %v303_v44 = vpop.f32.mrb[2].mxu1 }
 0x223   :  { %v307_v45 = vmul.f32 0.1, %v301_v42  ;;  %v304_v46 = vadd.f32 %v459_v40, %v303_v44  ;;  %v540_v47 = vpop.f32.mrb[3].mxu1 }
 0x225   :  { %v308_v48 = vmul.f32 0.1, %v304_v46  ;;  %v309_v49 = vmax.f32 %v301_v42, %v307_v45 }
 0x227   :  { %v310_v50 = vmax.f32 %v304_v46, %v308_v48 }
 0x229   :  { %v311_v51 = vpack.c.bf16 %v310_v50, %v309_v49 }
 0x22b   :  { %558 = vmatmul.mubr.bf16.vlgmr.msra.gmra.mrb[4].mxu0 %v311_v51 }
 0x2fe   :  { %v417_v53 = vpop.f32.mrb[4].mxu0 }
 0x2ff   :  { %v559_v54 = vpop.f32.mrb[5].mxu0  ;;  %v418_v56 = vadd.f32 %v468_v52, %v417_v53 }
 0x300   :  { %v420_v55 = vpop.f32.mrb[6].mxu0 }
 0x301   :  { %v421_v57 = vadd.f32 %v468_v52, %v420_v55  ;;  %v560_v58 = vpop.f32.mrb[7].mxu0 }
 0x303   :  { %v484_v59 = vpack.c.bf16 %v421_v57, %v418_v56 }
 0x305   :  { %485 = vst [vmem:[#allocation11] sm:$0xff] %v484_v59  }
 0x306   :  { %438 = vsyncadd [#allocation4], 64  ;;  %s744_s5 = smov [#allocation11]  }
 0x307   :  { %s439_s27 = sshll.u32 %s744_s5, 4  ;;  %s440_s27 = int_to_ptr.vmem [resolvable:$true] %s439_s27 }
 0x308   :  { %s703_s29 = scalar_lea.vmem %s440_s27, 64  ;;  %s707_s30 = scalar_lea.vmem %s440_s27, 128 }
 0x309   :  { %p704_p12 = scmp.ne.s32.totalorder %s440_s27, %s703_s29  ;;  %p708_p13 = scmp.lt.s32.totalorder %s440_s27, %s440_s27 }
 0x30a   :  { %p709_p0 = scmp.lt.s32.totalorder %s707_s30, %s703_s29 }
 0x30c   :  { %p710_p1 = por %p709_p0, %p708_p13 }
 0x30e   :  { %p711_p2 = pnand %p710_p1, %p704_p12 }
 0x310   :  { %714 = shalt.err (!%p711_p2)
}
 0x311   :  { %s715_s28 = scalar_lea.hbm %s917_s8, 64 }
 0x312   :  { %p716_p3 = scmp.ne.s32.totalorder %s917_s8, %s715_s28  ;;  %p719_p4 = scmp.lt.u32.totalorder %s715_s28, %s917_s8 }
 0x314   :  { %p721_p5 = pnand %p719_p4, %p716_p3 }
 0x316   :  { %724 = shalt.err (!%p721_p5)
}
 0x317   :  { %445 = dma.vmem_to_hbm [thread:$0]  %s440_s27, 64, %s917_s8, [#allocation4], %s739_s16, %s739_s16, %s740_s17  }
 0x318   :  { %731 = dma.done.wait [#allocation4], 128  }
 0x319   :  { %732 = vsyncadd [#allocation4], 4294967168 }
 0x31a   :  { %449 = vsyncpa [#allocation3], 1 }
 0x31b   :  { %450 = vsyncpa [#allocation6], 1 }
 0x31c   :  { %451 = vsyncpa [#allocation9], 1 }
 0x31d   :  { %452 = vsyncpa [#allocation4], 1 }

</bundles_post_ra>
